<compile_context>
chip_gen: v7x
topology: tpu7x:2x2x1
jax: 0.10.0
libtpu: 0.0.40
codegen_flags: <defaults>
</compile_context>

<pallas_src>
import math

import jax
import jax.numpy as jnp
from jax.experimental import pallas as pl
from jax.experimental.pallas import tpu as pltpu

# ---- problem sizes (small, consistent with the module) ----------------------
B = 2            # batch
LQ = 8           # query sequence length
LK = 8           # key/value sequence length
H = 32           # hidden size
NH = 4           # attention heads
DH = H // NH     # head dim
BH = B * H       # hidden lanes with batch packed into lane blocks (64)
G = B * NH * LK  # score columns: one LK-group per (batch, head)      (64)
BN_EPS = 1e-5
F32 = jnp.float32

# The packing below assumes LK == DH (so G == BH) and power-of-two group sizes.
assert LK == DH and G == BH, "vector packing assumes LK == DH"
assert LK & (LK - 1) == 0 and DH & (DH - 1) == 0
LK_SHIFT = LK.bit_length() - 1   # log2(LK)
DH_SHIFT = DH.bit_length() - 1   # log2(DH)

# rows of the hoisted per-lane parameter input (packed once at init)
ROW_BIAS, ROW_BN_SCALE, ROW_BN_SHIFT = 0, 1, 2
# rows of the per-call mask input
ROW_KV_MASK, ROW_Q_KEEP_BITS = 0, 1


# -----------------------------------------------------------------------------
# Pallas kernel: full forward for the WHOLE batch, single invocation.
# -----------------------------------------------------------------------------
def _diff_cross_attn_kernel(x_ref, w_ref, vp_ref, m_ref, out_ref):
    x = x_ref[...]                                        # (LQ, 2*BH): [q | kv]

    # --- fused Q / K / V projection: one MXU op ------------------------------
    proj = jnp.dot(x, w_ref[...], preferred_element_type=F32) \
        + vp_ref[ROW_BIAS:ROW_BIAS + 1, :]                # (LQ, 3*BH)
    qs = proj[:, :BH]                                     # already * 1/sqrt(DH)
    k = proj[:, BH:2 * BH]
    v = proj[:, 2 * BH:]

    # --- block-diagonal (batch x head) structure from ONE iota compare -------
    ri = jax.lax.broadcasted_iota(jnp.int32, (G, BH), 0)  # score-column index
    ci = jax.lax.broadcasted_iota(jnp.int32, (G, BH), 1)  # hidden-lane index
    same_grp = jnp.right_shift(ri, LK_SHIFT) == jnp.right_shift(ci, DH_SHIFT)
    rep = B * NH
    k_bd = jnp.where(same_grp, jnp.concatenate([k] * rep, axis=0), 0.0)  # (G, BH)
    v_bd = jnp.where(same_grp, jnp.concatenate([v] * rep, axis=0), 0.0)  # (G, BH)
    rhs = jnp.concatenate([v_bd, same_grp.astype(F32)], axis=1)          # (G, 2*BH)

    # --- scores for all (batch, head) groups: one MXU op ---------------------
    s = jax.lax.dot_general(qs, k_bd, (((1,), (1,)), ((), ())),
                            preferred_element_type=F32)                  # (LQ, G)
    # Row-max of the RAW scores plus a group-aware additive mask row (a batch
    # whose kv sequence is fully padded carries NO -1e6 bias) keeps every
    # group inside exp's range, so this matches the per-group softmax of the
    # reference even for entirely-padded kv rows.
    e = jnp.exp(s + m_ref[ROW_KV_MASK:ROW_KV_MASK + 1, :]
                - jnp.max(s, axis=-1, keepdims=True))                    # (LQ, G)

    # --- fused context + per-group softmax sums: one MXU op ------------------
    cg = jnp.dot(e, rhs, preferred_element_type=F32)      # (LQ, 2*BH) = [e@V_bd | e@grp]
    gsum = cg[:, BH:]                                     # group sums, lane-aligned
    inv = pl.reciprocal(gsum, approx=True)
    inv = inv * (2.0 - gsum * inv)                        # one Newton step -> ~2^-24
    p = e * inv                                           # attention probs (LQ, G)
    ctx = cg[:, :BH] * inv                                # context         (LQ, BH)

    # --- masked-mean diff + folded eval-mode BatchNorm ------------------------
    qbits = jnp.broadcast_to(
        m_ref[ROW_Q_KEEP_BITS:ROW_Q_KEEP_BITS + 1, :].astype(jnp.int32), (LQ, BH))
    li = jax.lax.broadcasted_iota(jnp.int32, (LQ, BH), 0)  # query position
    keep = jnp.bitwise_and(jnp.right_shift(qbits, li), 1).astype(F32)    # (LQ, BH)

    diff = (x[:, :BH] - ctx) * keep
    ksum = jnp.sum(keep, axis=0, keepdims=True)           # kept-query count per lane
    invk = pl.reciprocal(ksum, approx=True)
    invk = invk * (2.0 - ksum * invk)
    # NOTE: an entirely padded query sequence divides by zero, as in the module.
    d = jnp.sum(diff, axis=0, keepdims=True) * invk       # (1, BH)
    d = d * d
    d = d * vp_ref[ROW_BN_SCALE:ROW_BN_SCALE + 1, :BH] \
        + vp_ref[ROW_BN_SHIFT:ROW_BN_SHIFT + 1, :BH]      # folded eval-mode BN

    # --- single lane-dense (16, 128) output slab, unmasked stores -------------
    out_ref[0:LQ, :] = jnp.concatenate([p, p], axis=1)                   # rows 0..7
    d2 = jnp.concatenate([d, d], axis=1)                                 # (1, 2*BH)
    out_ref[LQ:, :] = jnp.broadcast_to(d2, (LQ, 2 * BH))                 # rows 8..15


# -----------------------------------------------------------------------------
# One-time parameter packing (hoisted out of the per-call path)
# -----------------------------------------------------------------------------
def pack_params(params):
    scale = 1.0 / math.sqrt(DH)
    eye_b = jnp.eye(B, dtype=F32)

    # block-diagonal over batch; Q and K|V fused into one (128, 192) weight
    wq_bd = jnp.kron(eye_b, params["wq"].astype(F32)) * scale            # (BH, BH)
    wk_bd = jnp.kron(eye_b, params["wk"].astype(F32))
    wv_bd = jnp.kron(eye_b, params["wv"].astype(F32))
    w_all = jnp.concatenate(
        [jnp.concatenate([wq_bd, jnp.zeros((BH, 2 * BH), F32)], axis=1),
         jnp.concatenate([jnp.zeros((BH, BH), F32), wk_bd, wv_bd], axis=1)],
        axis=0)                                                           # (2*BH, 3*BH)

    bias = jnp.concatenate([jnp.tile(params["bq"].astype(F32), B) * scale,
                            jnp.tile(params["bk"].astype(F32), B),
                            jnp.tile(params["bv"].astype(F32), B)])       # (3*BH,)

    # eval-mode BatchNorm folded into one scale/shift
    bn_scale = params["gamma"].astype(F32) / jnp.sqrt(
        params["var"].astype(F32) + BN_EPS)
    bn_shift = params["beta"].astype(F32) - params["mean"].astype(F32) * bn_scale
    pad = jnp.zeros((2 * BH,), F32)
    vparams = jnp.stack([bias,
                         jnp.concatenate([jnp.tile(bn_scale, B), pad]),
                         jnp.concatenate([jnp.tile(bn_shift, B), pad])],
                        axis=0)                                           # (3, 3*BH)

    return {"w_all": w_all, "vparams": vparams}


# -----------------------------------------------------------------------------
# Per-call wrapper: only mask rows + [q | kv] concat + output layout plumbing
# -----------------------------------------------------------------------------
@jax.jit
def diff_cross_attention(q_tensor, kv_tensor, q_mask, kv_mask, packed):
    """q/kv: (L, B, H); masks: bool (B, L), True = padded; packed: pack_params()."""
    # activations: (L, B, H) -> (L, B*H) (pure reshape), lane-concatenated
    x = jnp.concatenate([q_tensor.astype(F32).reshape(LQ, BH),
                         kv_tensor.astype(F32).reshape(LK, BH)], axis=1)  # (LQ, 2*BH)

    # kv additive mask over the (batch, head, key) score lanes; a batch whose kv
    # row is fully padded drops the -1e6 bias (per-group softmax is shift
    # invariant, so this reproduces the reference exactly in that case too).
    mask_b = jnp.where(jnp.all(kv_mask, axis=-1, keepdims=True), 0.0,
                       kv_mask.astype(F32) * (-1000000.0))                # (B, LK)
    mask_row = jnp.broadcast_to(mask_b[:, None, :], (B, NH, LK)).reshape(G)

    # q keep mask bit-packed: one small int per batch, bit l = query pos l kept
    pow2 = jnp.array([1 << i for i in range(LQ)], dtype=jnp.int32)
    bits = jnp.sum((1 - q_mask.astype(jnp.int32)) * pow2, axis=-1)        # (B,)
    bits_row = jnp.broadcast_to(bits.astype(F32)[:, None], (B, H)).reshape(BH)

    masks = jnp.stack([mask_row, bits_row], axis=0)                       # (2, BH)

    vmem = pl.BlockSpec(memory_space=pltpu.MemorySpace.VMEM)
    out = pl.pallas_call(
        _diff_cross_attn_kernel,
        out_shape=jax.ShapeDtypeStruct((2 * LQ, 2 * BH), F32),
        in_specs=[vmem, vmem, vmem, vmem],
        out_specs=vmem,
        # TODO(synk): for many independent (q, kv) pairs, add a leading
        # "parallel" grid axis over pairs so v7x's second TensorCore is used.
    )(x, packed["w_all"], packed["vparams"], masks)

    attn = out[:LQ, :G].reshape(LQ, B, NH, LK).transpose(1, 2, 0, 3)      # (B,NH,LQ,LK)
    diff = out[LQ, :BH].reshape(B, H)
    return diff, attn


# -----------------------------------------------------------------------------
# Pure-JAX reference (mirrors the PyTorch forward exactly, eval mode)
# -----------------------------------------------------------------------------
def reference(q_tensor, kv_tensor, q_mask, kv_mask, p):
    q = jnp.transpose(q_tensor, (1, 0, 2))
    kv = jnp.transpose(kv_tensor, (1, 0, 2))
    Q = q @ p["wq"] + p["bq"]
    K = kv @ p["wk"] + p["bk"]
    V = kv @ p["wv"] + p["bv"]
    split = lambda x, L: x.reshape(B, L, NH, DH).transpose(0, 2, 1, 3)
    Qh, Kh, Vh = split(Q, LQ), split(K, LK), split(V, LK)
    s = jnp.einsum("bhqd,bhkd->bhqk", Qh, Kh) / math.sqrt(DH)
    s = s + (kv_mask.astype(F32) * -1000000.0)[:, None, None, :]
    attn = jax.nn.softmax(s, axis=-1)
    ctx = jnp.einsum("bhqk,bhkd->bhqd", attn, Vh).transpose(0, 2, 1, 3).reshape(B, LQ, H)
    keep = 1.0 - q_mask.astype(F32)
    diff = (q - ctx) * keep[:, :, None]
    d = diff.sum(axis=1) / keep.sum(axis=1, keepdims=True)
    d = d * d
    d = (d - p["mean"]) / jnp.sqrt(p["var"] + BN_EPS) * p["gamma"] + p["beta"]
    return d, attn


if __name__ == "__main__":
    key = jax.random.PRNGKey(0)
    ks = jax.random.split(key, 10)

    # deterministic synthetic parameters (Linear weights stored as (in, out))
    params = {
        "wq": jax.random.normal(ks[0], (H, H), F32) * 0.05,
        "bq": jax.random.normal(ks[1], (H,), F32) * 0.01,
        "wk": jax.random.normal(ks[2], (H, H), F32) * 0.05,
        "bk": jax.random.normal(ks[3], (H,), F32) * 0.01,
        "wv": jax.random.normal(ks[4], (H, H), F32) * 0.05,
        "bv": jax.random.normal(ks[5], (H,), F32) * 0.01,
        "gamma": jnp.ones((H,), F32),
        "beta": jnp.zeros((H,), F32),
        "mean": jnp.zeros((H,), F32),   # BN running mean (init)
        "var": jnp.ones((H,), F32),     # BN running var (init)
    }

    packed = pack_params(params)        # one-time packing, outside the hot path

    q_tensor = jax.random.normal(ks[6], (LQ, B, H), F32)   # (L, B, H) like PyTorch
    kv_tensor = jax.random.normal(ks[7], (LK, B, H), F32)
    # True = padded position
    q_mask = jnp.array([[False] * 6 + [True] * 2,
                        [False] * 8], dtype=bool)            # (B, LQ)
    kv_mask = jnp.array([[False] * 7 + [True] * 1,
                         [False] * 5 + [True] * 3], dtype=bool)  # (B, LK)

    diff, attn = diff_cross_attention(q_tensor, kv_tensor, q_mask, kv_mask, packed)
    diff, attn = jax.block_until_ready((diff, attn))

    diff_ref, attn_ref = reference(q_tensor, kv_tensor, q_mask, kv_mask, params)
    assert jnp.allclose(diff, diff_ref, rtol=1e-4, atol=1e-4), "diff mismatch"
    assert jnp.allclose(attn, attn_ref, rtol=1e-4, atol=1e-4), "attn mismatch"

    print("KERNEL_OK")
</pallas_src>

<mosaic_0001>
module attributes {stable_mosaic.version = 11 : i64} {
  func.func @_diff_cross_attn_kernel(%arg0: memref<8x128xf32, #tpu.memory_space<vmem>>, %arg1: memref<128x192xf32, #tpu.memory_space<vmem>>, %arg2: memref<3x192xf32, #tpu.memory_space<vmem>>, %arg3: memref<2x64xf32, #tpu.memory_space<vmem>>, %arg4: memref<16x128xf32, #tpu.memory_space<vmem>>) attributes {dimension_semantics = [], scalar_prefetch = 0 : i64, scratch_operands = 0 : i64, tpu.core_type = #tpu.core_type<tc>} {
    %c0 = arith.constant 0 : index
    %c0_0 = arith.constant 0 : index
    %0 = vector.load %arg0[%c0, %c0_0] : memref<8x128xf32, #tpu.memory_space<vmem>>, vector<8x128xf32>
    %c0_1 = arith.constant 0 : index
    %c0_2 = arith.constant 0 : index
    %1 = vector.load %arg1[%c0_1, %c0_2] : memref<128x192xf32, #tpu.memory_space<vmem>>, vector<128x192xf32>
    %cst = arith.constant dense<0.000000e+00> : vector<8x192xf32>
    %2 = tpu.matmul %0, %1, %cst {dimension_numbers = #tpu.dot_dimension_numbers<[1], [0], [0], [1], [0, 0, 1, 1], [], []>} : vector<8x128xf32>, vector<128x192xf32>, vector<8x192xf32> -> vector<8x192xf32>
    %c0_3 = arith.constant 0 : index
    %c0_4 = arith.constant 0 : index
    %3 = vector.load %arg2[%c0_3, %c0_4] : memref<3x192xf32, #tpu.memory_space<vmem>>, vector<1x192xf32>
    %4 = vector.broadcast %3 : vector<1x192xf32> to vector<8x192xf32>
    %5 = arith.addf %2, %4 : vector<8x192xf32>
    %6 = vector.extract_strided_slice %5 {offsets = [0, 0], sizes = [8, 64], strides = [1, 1]} : vector<8x192xf32> to vector<8x64xf32>
    %7 = vector.extract_strided_slice %5 {offsets = [0, 64], sizes = [8, 64], strides = [1, 1]} : vector<8x192xf32> to vector<8x64xf32>
    %8 = vector.extract_strided_slice %5 {offsets = [0, 128], sizes = [8, 64], strides = [1, 1]} : vector<8x192xf32> to vector<8x64xf32>
    %9 = tpu.iota {dimensions = array<i32: 0>} : vector<64x64xi32>
    %10 = tpu.iota {dimensions = array<i32: 1>} : vector<64x64xi32>
    %c3_i32 = arith.constant 3 : i32
    %11 = vector.broadcast %c3_i32 : i32 to vector<64x64xi32>
    %12 = arith.shrsi %9, %11 : vector<64x64xi32>
    %c3_i32_5 = arith.constant 3 : i32
    %13 = vector.broadcast %c3_i32_5 : i32 to vector<64x64xi32>
    %14 = arith.shrsi %10, %13 : vector<64x64xi32>
    %15 = arith.cmpi eq, %12, %14 : vector<64x64xi32>
    %16 = tpu.concatenate %7, %7, %7, %7, %7, %7, %7, %7 in 0 : vector<8x64xf32>, vector<8x64xf32>, vector<8x64xf32>, vector<8x64xf32>, vector<8x64xf32>, vector<8x64xf32>, vector<8x64xf32>, vector<8x64xf32> -> vector<64x64xf32>
    %cst_6 = arith.constant 0.000000e+00 : f32
    %17 = vector.broadcast %cst_6 : f32 to vector<64x64xf32>
    %18 = arith.select %15, %16, %17 : vector<64x64xi1>, vector<64x64xf32>
    %19 = tpu.concatenate %8, %8, %8, %8, %8, %8, %8, %8 in 0 : vector<8x64xf32>, vector<8x64xf32>, vector<8x64xf32>, vector<8x64xf32>, vector<8x64xf32>, vector<8x64xf32>, vector<8x64xf32>, vector<8x64xf32> -> vector<64x64xf32>
    %cst_7 = arith.constant 0.000000e+00 : f32
    %20 = vector.broadcast %cst_7 : f32 to vector<64x64xf32>
    %21 = arith.select %15, %19, %20 : vector<64x64xi1>, vector<64x64xf32>
    %22 = arith.extui %15 : vector<64x64xi1> to vector<64x64xi32>
    %23 = arith.sitofp %22 : vector<64x64xi32> to vector<64x64xf32>
    %24 = tpu.concatenate %21, %23 in 1 : vector<64x64xf32>, vector<64x64xf32> -> vector<64x128xf32>
    %cst_8 = arith.constant dense<0.000000e+00> : vector<8x64xf32>
    %25 = tpu.matmul %6, %18, %cst_8 {dimension_numbers = #tpu.dot_dimension_numbers<[1], [1], [0], [0], [0, 0, 1, 0], [], []>} : vector<8x64xf32>, vector<64x64xf32>, vector<8x64xf32> -> vector<8x64xf32>
    %c0_9 = arith.constant 0 : index
    %c0_10 = arith.constant 0 : index
    %26 = vector.load %arg3[%c0_9, %c0_10] : memref<2x64xf32, #tpu.memory_space<vmem>>, vector<1x64xf32>
    %27 = vector.broadcast %26 : vector<1x64xf32> to vector<8x64xf32>
    %28 = arith.addf %25, %27 : vector<8x64xf32>
    %cst_11 = arith.constant dense<0xFF800000> : vector<8xf32>
    %29 = vector.multi_reduction <maximumf>, %25, %cst_11 [1] : vector<8x64xf32> to vector<8xf32>
    %30 = vector.shape_cast %29 : vector<8xf32> to vector<8x1xf32>
    %31 = vector.broadcast %30 : vector<8x1xf32> to vector<8x64xf32>
    %32 = arith.subf %28, %31 : vector<8x64xf32>
    %33 = math.exp %32 : vector<8x64xf32>
    %cst_12 = arith.constant dense<0.000000e+00> : vector<8x128xf32>
    %34 = tpu.matmul %33, %24, %cst_12 {dimension_numbers = #tpu.dot_dimension_numbers<[1], [0], [0], [1], [0, 0, 1, 1], [], []>} : vector<8x64xf32>, vector<64x128xf32>, vector<8x128xf32> -> vector<8x128xf32>
    %35 = vector.extract_strided_slice %34 {offsets = [0, 64], sizes = [8, 64], strides = [1, 1]} : vector<8x128xf32> to vector<8x64xf32>
    %36 = tpu.reciprocal %35 {approx = true} : vector<8x64xf32> -> vector<8x64xf32>
    %37 = arith.mulf %35, %36 : vector<8x64xf32>
    %cst_13 = arith.constant 2.000000e+00 : f32
    %38 = vector.broadcast %cst_13 : f32 to vector<8x64xf32>
    %39 = arith.subf %38, %37 : vector<8x64xf32>
    %40 = arith.mulf %36, %39 : vector<8x64xf32>
    %41 = arith.mulf %33, %40 : vector<8x64xf32>
    %42 = vector.extract_strided_slice %34 {offsets = [0, 0], sizes = [8, 64], strides = [1, 1]} : vector<8x128xf32> to vector<8x64xf32>
    %43 = arith.mulf %42, %40 : vector<8x64xf32>
    %c1 = arith.constant 1 : index
    %c0_14 = arith.constant 0 : index
    %44 = vector.load %arg3[%c1, %c0_14] : memref<2x64xf32, #tpu.memory_space<vmem>>, vector<1x64xf32>
    %45 = arith.fptosi %44 : vector<1x64xf32> to vector<1x64xi32>
    %46 = vector.shape_cast %45 : vector<1x64xi32> to vector<1x64xi32>
    %47 = vector.broadcast %46 : vector<1x64xi32> to vector<8x64xi32>
    %48 = tpu.iota {dimensions = array<i32: 0>} : vector<8x64xi32>
    %49 = arith.shrsi %47, %48 : vector<8x64xi32>
    %c1_i32 = arith.constant 1 : i32
    %50 = vector.broadcast %c1_i32 : i32 to vector<8x64xi32>
    %51 = arith.andi %49, %50 : vector<8x64xi32>
    %52 = arith.sitofp %51 : vector<8x64xi32> to vector<8x64xf32>
    %53 = vector.extract_strided_slice %0 {offsets = [0, 0], sizes = [8, 64], strides = [1, 1]} : vector<8x128xf32> to vector<8x64xf32>
    %54 = arith.subf %53, %43 : vector<8x64xf32>
    %55 = arith.mulf %54, %52 : vector<8x64xf32>
    %cst_15 = arith.constant dense<0.000000e+00> : vector<64xf32>
    %56 = vector.multi_reduction <add>, %52, %cst_15 [0] : vector<8x64xf32> to vector<64xf32>
    %57 = vector.shape_cast %56 : vector<64xf32> to vector<1x64xf32>
    %58 = tpu.reciprocal %57 {approx = true} : vector<1x64xf32> -> vector<1x64xf32>
    %59 = arith.mulf %57, %58 : vector<1x64xf32>
    %cst_16 = arith.constant 2.000000e+00 : f32
    %60 = vector.broadcast %cst_16 : f32 to vector<1x64xf32>
    %61 = arith.subf %60, %59 : vector<1x64xf32>
    %62 = arith.mulf %58, %61 : vector<1x64xf32>
    %cst_17 = arith.constant dense<0.000000e+00> : vector<64xf32>
    %63 = vector.multi_reduction <add>, %55, %cst_17 [0] : vector<8x64xf32> to vector<64xf32>
    %64 = vector.shape_cast %63 : vector<64xf32> to vector<1x64xf32>
    %65 = arith.mulf %64, %62 : vector<1x64xf32>
    %66 = arith.mulf %65, %65 : vector<1x64xf32>
    %c1_18 = arith.constant 1 : index
    %c0_19 = arith.constant 0 : index
    %67 = vector.load %arg2[%c1_18, %c0_19] : memref<3x192xf32, #tpu.memory_space<vmem>>, vector<1x64xf32>
    %68 = arith.mulf %66, %67 : vector<1x64xf32>
    %c2 = arith.constant 2 : index
    %c0_20 = arith.constant 0 : index
    %69 = vector.load %arg2[%c2, %c0_20] : memref<3x192xf32, #tpu.memory_space<vmem>>, vector<1x64xf32>
    %70 = arith.addf %68, %69 : vector<1x64xf32>
    %71 = tpu.concatenate %41, %41 in 1 : vector<8x64xf32>, vector<8x64xf32> -> vector<8x128xf32>
    %c0_21 = arith.constant 0 : index
    %c0_22 = arith.constant 0 : index
    %72 = vector.load %arg4[%c0_21, %c0_22] : memref<16x128xf32, #tpu.memory_space<vmem>>, vector<8x128xf32>
    tpu.vector_store %arg4[%c0_21, %c0_22], %71 {strides = array<i32>} : memref<16x128xf32, #tpu.memory_space<vmem>>, vector<8x128xf32>,
    %73 = tpu.concatenate %70, %70 in 1 : vector<1x64xf32>, vector<1x64xf32> -> vector<1x128xf32>
    %74 = vector.shape_cast %73 : vector<1x128xf32> to vector<1x128xf32>
    %75 = vector.broadcast %74 : vector<1x128xf32> to vector<8x128xf32>
    %c8 = arith.constant 8 : index
    %c0_23 = arith.constant 0 : index
    %76 = vector.load %arg4[%c8, %c0_23] : memref<16x128xf32, #tpu.memory_space<vmem>>, vector<8x128xf32>
    tpu.vector_store %arg4[%c8, %c0_23], %75 {strides = array<i32>} : memref<16x128xf32, #tpu.memory_space<vmem>>, vector<8x128xf32>,
    return
  }
}

</mosaic_0001>

<bundles_post_ra>
// kernel: squeeze.1
= control target key start
LH: loop header
LB: loop body
LE: loop exit
PB: predicated region body
PF: predicated region fallthrough
CT: control target
= control target key end

     0   :  { %s85_s0 = inlined_call_operand.vmem [shape: f32[64], index: 0, kind: input, shape index: {}]   ;;  %s86_s1 = inlined_call_operand.hbm [shape: f32[2,32], index: 1, kind: output, shape index: {}]  }
   0x1   :  { %v5_v0 = vld [vmem:[%s85_s0] sm:$0x1] }
   0x2   :  { %2 = vsyncpa [#allocation1], 0  ;;  %6 = vst [vmem:[#allocation3] sm:$0x1] %v5_v0  ;;  %vm8_vm0 = vcmask 261120   ;;  %s58_s0 = smov 96  }
   0x3   :  { %s59_s8 = smov [#allocation0]  }
   0x4   :  { %s26_s9 = sshll.u32 %s59_s8, 4  ;;  %s27_s9 = int_to_ptr.vmem [resolvable:$true] %s26_s9 }
   0x5   :  { %s34_s10 = scalar_lea.vmem %s27_s9, 32  ;;  %p39_p1 = scmp.lt.s32.totalorder %s27_s9, %s27_s9 }
   0x6   :  { %p35_p0 = scmp.ne.s32.totalorder %s27_s9, %s34_s10  ;;  %p40_p2 = scmp.lt.s32.totalorder %s34_s10, %s34_s10 }
   0x8   :  { %p41_p3 = por %p40_p2, %p39_p1 }
   0x9   :  { %v10_v1 = vld [vmem:[#allocation3] sm:$0x1]  }
   0xa   :  { %v7_v2 = vld [vmem:[#allocation3] sm:$0x1]   ;;  %11 = vrot.lane.b32.xlu0 %v10_v1, %s58_s0  ;;  %p42_p4 = pnand %p41_p3, %p35_p0 }
   0xb   :  { %9 = vst.msk [vmem:[#allocation2] sm:$0x1] %vm8_vm0, %v7_v2  }
  0x7c   :  { %v12_v3 = vpop.permute.xlu0 %11  }
  0x7d   :  { %15 = vst.msk [vmem:[#allocation2 + $0x1] sm:$0x1] %vm8_vm0, %v12_v3  }
  0x84   :  { %v19_v4 = vld [vmem:[#allocation2] sm:$0x3] }
  0x85   :  { %21 = vst [vmem:[#allocation0] sm:$0x3] %v19_v4 }
  0x86   :  { %45 = shalt.err (!%p42_p4)
}
  0x87   :  { %s46_s13 = scalar_lea.hbm %s86_s1, 32 }
  0x88   :  { %p47_p5 = scmp.ne.s32.totalorder %s86_s1, %s46_s13  ;;  %p50_p6 = scmp.lt.u32.totalorder %s46_s13, %s86_s1 }
  0x8a   :  { %p52_p7 = pnand %p50_p6, %p47_p5 }
  0x8c   :  { %55 = shalt.err (!%p52_p7)
}
  0x8d   :  { %29 = dma.vmem_to_hbm [thread:$0]  %s27_s9, 32, %s86_s1, [#allocation1]  }
  0x8e   :  { %56 = dma.done.wait [#allocation1], 32  }
  0x8f   :  { %57 = vsyncadd [#allocation1], 4294967264 }
  0x90   :  { %31 = vsyncpa [#allocation1], 1 }

// kernel: diff_cross_attention.1
= control target key start
LH: loop header
LB: loop body
LE: loop exit
PB: predicated region body
PF: predicated region fallthrough
CT: control target
= control target key end

     0   :  { %v52_v0 = vlaneseq  ;;  %v651_v4 = vmov 0.0   ;;  %s652_s25 = smov 64   ;;  %vm229_vm8 = vcmask 523264   ;;  %vm654_vm9 = vmmov 0   ;;  %s962_s1 = inlined_call_operand.vmem [shape: f32[128,192], index: 1, kind: input, shape index: {}]   ;;  %s963_s0 = inlined_call_operand.vmem [shape: f32[8,128], index: 0, kind: input, shape index: {}]   ;;  %s964_s2 = inlined_call_operand.vmem [shape: f32[3,192], index: 2, kind: input, shape index: {}]   ;;  %s965_s3 = inlined_call_operand.vmem [shape: f32[2,64], index: 3, kind: input, shape index: {}]   ;;  %s966_s4 = inlined_call_operand.vmem [shape: f32[16,128], index: 4, kind: output, shape index: {}]  }
   0x1   :  { %v19_v1 = vld [vmem:[%s962_s1 + $0x8] sm:$0xff]  ;;  %v21_v2 = vld [vmem:[%s962_s1 + $0x18] sm:$0xff]  ;;  %v18_v3 = vld [vmem:[%s962_s1] sm:$0xff]  ;;  %126 = vmatprep.mubr.f32.mxu0 %v651_v4  ;;  %537 = vmatprep.mubr.msk.f32.mxu1 %vm654_vm9, %v651_v4 }
   0x2   :  { %v559_v5 = vpack.c.bf16 %v21_v2, %v19_v1  ;;  %v20_v6 = vld [vmem:[%s962_s1 + $0x10] sm:$0xff]  ;;  %v23_v7 = vld [vmem:[%s962_s1 + $0x28] sm:$0xff]  ;;  %v25_v8 = vld [vmem:[%s962_s1 + $0x38] sm:$0xff]  ;;  %v699_v9 = vshrl.u32 %v52_v0, 7  ;;  %v143_v10 = vand.u32 127, %v52_v0 }
   0x3   :  { %v561_v11 = vpack.c.bf16 %v20_v6, %v18_v3  ;;  %v563_v12 = vpack.c.bf16 %v25_v8, %v23_v7  ;;  %v22_v13 = vld [vmem:[%s962_s1 + $0x20] sm:$0xff]  ;;  %v24_v14 = vld [vmem:[%s962_s1 + $0x30] sm:$0xff]  ;;  %v27_v15 = vld [vmem:[%s962_s1 + $0x48] sm:$0xff] }
   0x4   :  { %560 = vmatprep.subr.bf16.mxu0 %v559_v5  ;;  %v29_v16 = vld [vmem:[%s962_s1 + $0x58] sm:$0xff]  ;;  %v135_v17 = vadd.s32 8, %v699_v9  ;;  %v144_v18 = vshra.s32 %v699_v9, 3  ;;  %v152_v19 = vshra.s32 %v143_v10, 3  ;;  %v565_v20 = vpack.c.bf16 %v24_v14, %v22_v13  ;;  %v26_v24 = vld [vmem:[%s962_s1 + $0x40] sm:$0xff]  ;;  %v28_v25 = vld [vmem:[%s962_s1 + $0x50] sm:$0xff] }
   0x5   :  { %562 = vmatpush1.bf16.msra.mxu0 %v561_v11  ;;  %v136_v21 = vadd.s32 16, %v699_v9  ;;  %v137_v22 = vadd.s32 24, %v699_v9  ;;  %v567_v23 = vpack.c.bf16 %v29_v16, %v27_v15  ;;  %v31_v28 = vld [vmem:[%s962_s1 + $0x68] sm:$0xff]  ;;  %v33_v29 = vld [vmem:[%s962_s1 + $0x78] sm:$0xff]  ;;  %v138_v32 = vadd.s32 32, %v699_v9  ;;  %v30_v40 = vld [vmem:[%s962_s1 + $0x60] sm:$0xff] }
   0x6   :  { %564 = vmatprep.subr.bf16.mxu0 %v563_v12  ;;  %v145_v26 = vshra.s32 %v135_v17, 3  ;;  %vm723_vm0 = vcmp.eq.s32.totalorder %v144_v18, %v152_v19  ;;  %v139_v35 = vadd.s32 40, %v699_v9  ;;  %v569_v36 = vpack.c.bf16 %v28_v25, %v26_v24  ;;  %v32_v41 = vld [vmem:[%s962_s1 + $0x70] sm:$0xff]  ;;  %v35_v45 = vld [vmem:[%s962_s1 + $0x88] sm:$0xff]  ;;  %v37_v46 = vld [vmem:[%s962_s1 + $0x98] sm:$0xff] }
   0x7   :  { %v484_v30 = vsel %vm723_vm0, 1.0, %v651_v4  ;;  %v146_v31 = vshra.s32 %v136_v21, 3  ;;  %v147_v34 = vshra.s32 %v137_v22, 3  ;;  %v571_v39 = vpack.c.bf16 %v33_v29, %v31_v28  ;;  %v34_v56 = vld [vmem:[%s962_s1 + $0x80] sm:$0xff]  ;;  %v36_v57 = vld [vmem:[%s962_s1 + $0x90] sm:$0xff]  ;;  %v39_v61 = vld [vmem:[%s962_s1 + $0xa8] sm:$0xff] }
   0x8   :  { %vm737_vm1 = vcmp.eq.s32.totalorder %v145_v26, %v152_v19  ;;  %v148_v48 = vshra.s32 %v138_v32, 3  ;;  %v149_v50 = vshra.s32 %v139_v35, 3  ;;  %v140_v51 = vadd.s32 48, %v699_v9  ;;  %v41_v62 = vld [vmem:[%s962_s1 + $0xb8] sm:$0xff]  ;;  %v38_v8 = vld [vmem:[%s962_s1 + $0xa0] sm:$0xff]  ;;  %v40_v10 = vld [vmem:[%s962_s1 + $0xb0] sm:$0xff] }
   0x9   :  { %566 = vmatpush1.bf16.msra.mxu0 %v565_v20  ;;  %v485_v37 = vsel %vm737_vm1, 1.0, %v651_v4  ;;  %vm745_vm2 = vcmp.eq.s32.totalorder %v146_v31, %v152_v19  ;;  %vm755_vm3 = vcmp.eq.s32.totalorder %v147_v34, %v152_v19  ;;  %v573_v52 = vpack.c.bf16 %v32_v41, %v30_v40  ;;  %v43_v12 = vld [vmem:[%s962_s1 + $0xc8] sm:$0xff]  ;;  %v45_v13 = vld [vmem:[%s962_s1 + $0xd8] sm:$0xff]  ;;  %v42_v17 = vld [vmem:[%s962_s1 + $0xc0] sm:$0xff] }
   0xa   :  { %568 = vmatprep.subr.bf16.mxu0 %v567_v23  ;;  %v625_v42 = vpack.i.bf16 %v485_v37, %v484_v30  ;;  %v486_v44 = vsel %vm745_vm2, 1.0, %v651_v4  ;;  %v487_v47 = vsel %vm755_vm3, 1.0, %v651_v4  ;;  %vm773_vm4 = vcmp.eq.s32.totalorder %v148_v48, %v152_v19  ;;  %v44_v18 = vld [vmem:[%s962_s1 + $0xd0] sm:$0xff]  ;;  %v49_v20 = vld [vmem:[%s962_s1 + $0xf8] sm:$0xff]  ;;  %v46_v23 = vld [vmem:[%s962_s1 + $0xe0] sm:$0xff] }
   0xb   :  { %v630_v49 = vpack.i.bf16 %v487_v47, %v486_v44  ;;  %v141_v54 = vadd.s32 56, %v699_v9  ;;  %v575_v55 = vpack.c.bf16 %v37_v46, %v35_v45  ;;  %vm784_vm5 = vcmp.eq.s32.totalorder %v149_v50, %v152_v19  ;;  %v48_v24 = vld [vmem:[%s962_s1 + $0xf0] sm:$0xff]  ;;  %v850_v26 = vld [vmem:[%s963_s0] sm:$0xff]  ;;  %vm902_vm10 = vmpackc.low %vm229_vm8, %vm229_vm8 }
   0xc   :  { %626 = vrot.lane.b32.xlu1 %v625_v42, %s652_s25  ;;  %v488_v59 = vsel %vm773_vm4, 1.0, %v651_v4  ;;  %v150_v60 = vshra.s32 %v140_v51, 3  ;;  %v489_v63 = vsel %vm784_vm5, 1.0, %v651_v4  ;;  %v577_v3 = vpack.c.bf16 %v36_v57, %v34_v56  ;;  %v50_v31 = vld [vmem:[%s964_s2] ss:$4 sm:$0x3] }
   0xd   :  { %570 = vmatpush1.bf16.msra.mxu0 %v569_v36  ;;  %v151_v0 = vshra.s32 %v141_v54, 3  ;;  %v635_v1 = vpack.i.bf16 %v489_v63, %v488_v59  ;;  %v579_v7 = vpack.c.bf16 %v41_v62, %v39_v61  ;;  %v581_v15 = vpack.c.bf16 %v40_v10, %v38_v8  ;;  %v501_v2 = vld [vmem:[%s965_s3] ss:$0 sm:$0xff] }
   0xe   :  { %572 = vmatprep.subr.bf16.mxu0 %v571_v39  ;;  %vm801_vm6 = vcmp.eq.s32.totalorder %v150_v60, %v152_v19  ;;  %v583_v16 = vpack.c.bf16 %v45_v13, %v43_v12  ;;  %v585_v21 = vpack.c.bf16 %v44_v18, %v42_v17  ;;  %v589_v25 = vpack.c.bf16 %v48_v24, %v46_v23 }
   0xf   :  { %vm805_vm7 = vcmp.eq.s32.totalorder %v151_v0, %v152_v19  ;;  %v490_v6 = vsel %vm801_vm6, 1.0, %v651_v4  ;;  %v47_v19 = vld [vmem:[%s962_s1 + $0xe8] sm:$0xff]  ;;  %v653_v28 = vmov 0.0|0.0   ;;  %v856_v30 = vsub.s32 0, %v699_v9 }
  0x10   :  { %631 = vrot.lane.b32.xlu1 %v630_v49, %s652_s25  ;;  %v491_v11 = vsel %vm805_vm7, 1.0, %v651_v4  ;;  %v587_v22 = vpack.c.bf16 %v49_v20, %v47_v19  ;;  %591 = vmatprep.subr.bf16.mxu1 %v653_v28  ;;  %v58_v32 = vsub.s32 1, %v699_v9 }
  0x11   :  { %574 = vmatpush1.bf16.msra.mxu0 %v573_v52  ;;  %v640_v14 = vpack.i.bf16 %v491_v11, %v490_v6  ;;  %v55_v35 = vrot.slane %v50_v31, %v856_v30 }
  0x12   :  { %576 = vmatprep.subr.bf16.mxu0 %v575_v55  ;;  %v59_v36 = vrot.slane %v50_v31, %v58_v32 }
  0x14   :  { %636 = vrot.lane.b32.xlu1 %v635_v1, %s652_s25 }
  0x15   :  { %578 = vmatpush1.bf16.msra.mxu0 %v577_v3 }
  0x16   :  { %580 = vmatprep.subr.bf16.mxu0 %v579_v7 }
  0x18   :  { %641 = vrot.lane.b32.xlu1 %v640_v14, %s652_s25 }
  0x19   :  { %582 = vmatpush1.bf16.msra.mxu0 %v581_v15 }
  0x1a   :  { %584 = vmatprep.subr.bf16.mxu0 %v583_v16 }
  0x1d   :  { %586 = vmatpush1.bf16.msra.mxu0 %v585_v21 }
  0x1e   :  { %588 = vmatprep.subr.bf16.mxu0 %v587_v22 }
  0x21   :  { %590 = vmatpush1.bf16.msra.mxu0 %v589_v25 }
  0x22   :  { %607 = vmatprep.subr.bf16.mxu0 %v653_v28 }
  0x24   :  { %127 = vmatmul.mubr.f32.vlgmr.msra.gmra.mrb[0].mxu0 %v850_v26 }
  0x25   :  { %556 = vmatprep.mubr.msk.f32.mxu0 %vm654_vm9, %v651_v4 }
  0x7e   :  { %v627_v29 = vpop.permute.xlu1 %626 }
  0x7f   :  { %v629_v39 = vunpack.i.h.bf16 %v627_v29  ;;  %v628_v40 = vunpack.i.l.bf16 %v627_v29 }
  0x82   :  { %v632_v34 = vpop.permute.xlu1 %631 }
  0x83   :  { %v634_v46 = vunpack.i.h.bf16 %v632_v34  ;;  %v633_v47 = vunpack.i.l.bf16 %v632_v34 }
  0x86   :  { %v637_v44 = vpop.permute.xlu1 %636 }
  0x87   :  { %v639_v56 = vunpack.i.h.bf16 %v637_v44  ;;  %v638_v57 = vunpack.i.l.bf16 %v637_v44 }
  0x8a   :  { %v642_v61 = vpop.permute.xlu1 %641 }
  0x8b   :  { %v644_v1 = vunpack.i.h.bf16 %v642_v61  ;;  %v643_v3 = vunpack.i.l.bf16 %v642_v61 }
  0xf7   :  { %v128_v37 = vpop.f32.mrb[0].mxu0 }
  0xf8   :  { %v863_v41 = vadd.f32 %v128_v37, %v55_v35  ;;  %v130_v42 = vpop.f32.mrb[1].mxu0 }
  0xf9   :  { %v131_v45 = vadd.f32 %v130_v42, %v59_v36 }
  0xfa   :  { %162 = vrot.lane.b32.xlu0 %v863_v41, %s652_s25 }
  0xfb   :  { %v173_v48 = vsel %vm723_vm0, %v131_v45, 0.0  ;;  %v174_v49 = vsel %vm737_vm1, %v131_v45, 0.0  ;;  %v175_v54 = vsel %vm745_vm2, %v131_v45, 0.0  ;;  %v176_v55 = vsel %vm755_vm3, %v131_v45, 0.0 }
  0xfc   :  { %v230_v50 = vsel %vm229_vm8, %v173_v48, %v628_v40  ;;  %v231_v51 = vsel %vm229_vm8, %v174_v49, %v629_v39  ;;  %v232_v59 = vsel %vm229_vm8, %v175_v54, %v633_v47  ;;  %v233_v60 = vsel %vm229_vm8, %v176_v55, %v634_v46  ;;  %v429_v40 = vld [vmem:[%s965_s3 + $0x1] sm:$0x1] }
  0xfd   :  { %v608_v52 = vpack.c.bf16 %v231_v51, %v230_v50  ;;  %v177_v62 = vsel %vm773_vm4, %v131_v45, 0.0  ;;  %v178_v63 = vsel %vm784_vm5, %v131_v45, 0.0  ;;  %v611_v0 = vpack.c.bf16 %v233_v60, %v232_v59 }
  0xfe   :  { %v234_v6 = vsel %vm229_vm8, %v177_v62, %v638_v57  ;;  %v235_v7 = vsel %vm229_vm8, %v178_v63, %v639_v56  ;;  %v179_v8 = vsel %vm801_vm6, %v131_v45, 0.0  ;;  %v180_v10 = vsel %vm805_vm7, %v131_v45, 0.0 }
  0xff   :  { %609 = vmatpush3.bf16.msra.mxu0 %v608_v52  ;;  %v614_v11 = vpack.c.bf16 %v235_v7, %v234_v6  ;;  %v236_v12 = vsel %vm229_vm8, %v179_v8, %v643_v3  ;;  %v237_v13 = vsel %vm229_vm8, %v180_v10, %v644_v1 }
 0x100   :  { %610 = vmatprep.subr.bf16.mxu0 %v653_v28  ;;  %v617_v14 = vpack.c.bf16 %v237_v13, %v236_v12  ;;  %v460_v12 = vld [vmem:[%s964_s2 + $0x1] sm:$0x1] }
 0x103   :  { %612 = vmatpush3.bf16.msra.mxu0 %v611_v0 }
 0x104   :  { %613 = vmatprep.subr.bf16.mxu0 %v653_v28 }
 0x107   :  { %615 = vmatpush3.bf16.msra.mxu0 %v614_v11 }
 0x108   :  { %616 = vmatprep.subr.bf16.mxu0 %v653_v28 }
 0x10b   :  { %618 = vmatpush3.bf16.msra.mxu0 %v617_v14 }
 0x16c   :  { %v163_v15 = vpop.permute.xlu0 %162 }
 0x16d   :  { %v165_v16 = vsel %vm723_vm0, %v163_v15, 0.0  ;;  %v166_v17 = vsel %vm737_vm1, %v163_v15, 0.0  ;;  %v167_v4 = vsel %vm745_vm2, %v163_v15, 0.0  ;;  %v168_v27 = vsel %vm755_vm3, %v163_v15, 0.0 }
 0x16e   :  { %v592_v19 = vpack.c.bf16 %v166_v17, %v165_v16  ;;  %v596_v33 = vpack.c.bf16 %v168_v27, %v167_v4  ;;  %v169_v20 = vsel %vm773_vm4, %v163_v15, 0.0  ;;  %v170_v21 = vsel %vm784_vm5, %v163_v15, 0.0 }
 0x16f   :  { %v600_v22 = vpack.c.bf16 %v170_v21, %v169_v20  ;;  %v171_v38 = vsel %vm801_vm6, %v163_v15, 0.0  ;;  %v172_v43 = vsel %vm805_vm7, %v163_v15, 0.0 }
 0x170   :  { %594 = vmatpush3.bf16.xpose.msk.msra.mxu1 %vm902_vm10, %v592_v19  ;;  %v604_v23 = vpack.c.bf16 %v172_v43, %v171_v38 }
 0x171   :  { %595 = vmatprep.subr.bf16.mxu1 %v653_v28 }
 0x178   :  { %598 = vmatpush3.bf16.xpose.msk.msra.mxu1 %vm902_vm10, %v596_v33 }
 0x179   :  { %599 = vmatprep.subr.bf16.mxu1 %v653_v28 }
 0x180   :  { %602 = vmatpush3.bf16.xpose.msk.msra.mxu1 %vm902_vm10, %v600_v22 }
 0x181   :  { %603 = vmatprep.subr.bf16.mxu1 %v653_v28 }
 0x188   :  { %606 = vmatpush3.bf16.xpose.msk.msra.mxu1 %vm902_vm10, %v604_v23 }
 0x18f   :  { %538 = vmatmul.mubr.msk.f32.vlgmr.msra.gmra.mrb[0].mxu1 %vm229_vm8, %v863_v41  ;;  %v619_v41 = vtrunc.f32 %v429_v40 }
 0x191   :  { %v620_v42 = vcvt.f32.s32 %v619_v41 }
 0x193   :  { %v434_v44 = vrot.slane %v620_v42, %v856_v30 }
 0x195   :  { %v435_v45 = vshra.s32 %v434_v44, %v699_v9 }
 0x197   :  { %v436_v46 = vand.u32 1, %v435_v45 }
 0x199   :  { %v437_v47 = vcvt.s32.f32 %v436_v46 }
 0x19b   :  { %v440_v48 = vsel %vm229_vm8, %v437_v47, 0.0 }
 0x19c   :  { %v441_v49 = vrot.slane %v440_v48, 4 }
 0x19e   :  { %v442_v50 = vadd.f32 %v441_v49, %v440_v48 }
 0x1a0   :  { %v443_v51 = vrot.slane %v442_v50, 2 }
 0x1a2   :  { %v444_v52 = vadd.f32 %v443_v51, %v442_v50 }
 0x1a4   :  { %v445_v54 = vrot.slane %v444_v52, 1 }
 0x1a6   :  { %v446_v55 = vadd.f32 %v445_v54, %v444_v52 }
 0x262   :  { %v330_v53 = vpop.f32.mrb[0].mxu1 }
 0x263   :  { %v539_v58 = vpop.f32.mrb[1].mxu1  ;;  %v340_v24 = vsel %vm229_vm8, %v330_v53, -inf  ;;  %v339_v25 = vadd.f32 %v501_v2, %v330_v53 }
 0x264   :  { %341 = vmax.xlane.f32.xlu0 %v340_v24 }
 0x2f1   :  { %v342_v28 = vpop.xlane.xlu0 %341 }
 0x2f2   :  { %v343_v5 = vsub.f32 %v339_v25, %v342_v28 }
 0x2f4   :  { %v344_v29 = vmul.f32 1.442695, %v343_v5 }
 0x2f6   :  { %645 = vpow2.f32 %v344_v29 }
 0x300   :  { %v646_v31 = vpop.eup %645 }
 0x301   :  { %557 = vmatmul.mubr.msk.f32.vlgmr.msra.gmra.mrb[2].mxu0 %vm229_vm8, %v646_v31 }
 0x3d4   :  { %v415_v32 = vpop.f32.mrb[2].mxu0 }
 0x3d5   :  { %647 = vrcp.f32 %v415_v32  ;;  %v558_v34 = vpop.f32.mrb[3].mxu0 }
 0x3d6   :  { %649 = vrcp.f32 %v446_v55 }
 0x3df   :  { %v648_v35 = vpop.eup %647 }
 0x3e0   :  { %v420_v36 = vmul.f32 %v648_v35, %v415_v32  ;;  %v650_v60 = vpop.eup %649 }
 0x3e1   :  { %v448_v63 = vmul.f32 %v650_v60, %v446_v55 }
 0x3e2   :  { %v421_v37 = vsub.f32 2.0, %v420_v36 }
 0x3e3   :  { %v449_v3 = vsub.f32 2.0, %v448_v63 }
 0x3e4   :  { %v422_v39 = vmul.f32 %v648_v35, %v421_v37 }
 0x3e5   :  { %v450_v7 = vmul.f32 %v650_v60, %v449_v3 }
 0x3e6   :  { %424 = vrot.lane.b32.xlu1 %v422_v39, %s652_s25 }
 0x458   :  { %v425_v56 = vpop.permute.xlu1 %424 }
 0x459   :  { %v428_v57 = vmul.f32 %v425_v56, %v415_v32  ;;  %v427_v16 = vmul.f32 %v646_v31, %v425_v56 }
 0x45b   :  { %v438_v59 = vsub.f32 %v850_v26, %v428_v57  ;;  %v462_v26 = vld [vmem:[%s964_s2 + $0x2] sm:$0x1] }
 0x45d   :  { %v439_v61 = vmul.f32 %v438_v59, %v437_v47 }
 0x45f   :  { %v451_v62 = vsel %vm229_vm8, %v439_v61, 0.0 }
 0x460   :  { %v452_v9 = vrot.slane %v451_v62, 4 }
 0x462   :  { %v453_v0 = vadd.f32 %v452_v9, %v451_v62 }
 0x464   :  { %v454_v1 = vrot.slane %v453_v0, 2 }
 0x466   :  { %v455_v6 = vadd.f32 %v454_v1, %v453_v0 }
 0x468   :  { %v456_v8 = vrot.slane %v455_v6, 1 }
 0x46a   :  { %v457_v10 = vadd.f32 %v456_v8, %v455_v6 }
 0x46c   :  { %v458_v11 = vmul.f32 %v457_v10, %v450_v7 }
 0x46e   :  { %v459_v13 = vmul.f32 %v458_v11, %v458_v11 }
 0x470   :  { %v461_v14 = vmul.f32 %v460_v12, %v459_v13 }
 0x472   :  { %v463_v15 = vadd.f32 %v462_v26, %v461_v14 }
 0x474   :  { %471 = vrot.lane.b32.xlu1 %v463_v15, %s652_s25 }
 0x478   :  { %465 = vrot.lane.b32.xlu1 %v427_v16, %s652_s25 }
 0x4e6   :  { %v472_v17 = vpop.permute.xlu1 %471 }
 0x4e7   :  { %v474_v18 = vsel %vm229_vm8, %v463_v15, %v472_v17 }
 0x4e8   :  { %v478_v19 = vrot.slane %v474_v18, %v856_v30 }
 0x4ea   :  { %479 = vst [vmem:[%s966_s4 + $0x8] sm:$0xff] %v478_v19  ;;  %v466_v4 = vpop.permute.xlu1 %465 }
 0x4eb   :  { %v468_v27 = vsel %vm229_vm8, %v427_v16, %v466_v4 }
 0x4ec   :  { %469 = vst [vmem:[%s966_s4] sm:$0xff] %v468_v27 }

</bundles_post_ra>
